<compile_context>
chip_gen: v6e
topology: v6e:2x2x1
jax: 0.10.0
libtpu: 0.0.40
codegen_flags: <defaults>
</compile_context>

<pallas_src>
import numpy as np
import jax
import jax.numpy as jnp
from jax.experimental import pallas as pl
from jax.experimental.pallas import tpu as pltpu


# --------------------------------------------------------------------------
# Bilinear x2 interpolation matrix, PyTorch F.interpolate(..., scale_factor=2,
# mode='bilinear', align_corners=True) semantics (float32).
# --------------------------------------------------------------------------
def _bilinear_matrix(n_in, n_out):
    coords = np.arange(n_out, dtype=np.float64) * (n_in - 1) / (n_out - 1)
    lo = np.clip(np.floor(coords).astype(np.int64), 0, n_in - 1)
    hi = np.clip(lo + 1, 0, n_in - 1)
    w_hi = coords - lo
    U = np.zeros((n_out, n_in), dtype=np.float32)
    np.add.at(U, (np.arange(n_out), lo), 1.0 - w_hi)
    np.add.at(U, (np.arange(n_out), hi), w_hi)
    return U


# --------------------------------------------------------------------------
# Kernels (one grid step == one batch element; two MXU matmuls per step)
# --------------------------------------------------------------------------
def _flat_kernel(x_ref, kupt_ref, w_ref, b_ref, o_ref):
    """Flattened-spatial, lane-dense path.
    x_ref   : (Cin, H*W)        input plane rows (f32, free NCHW view)
    kupt_ref: (H*W, 4*H*W)      kron(Uh, Uw)^T, bf16
    w_ref   : (Cout, Cin)       1x1 conv weights, f32
    b_ref   : (Cout, 1)         bias, f32
    o_ref   : (Cout, 4*H*W)     output slab (free NCHW view)
    """
    up = jnp.dot(x_ref[...].astype(jnp.bfloat16), kupt_ref[...],
                 preferred_element_type=jnp.float32)                # (Cin, 4HW)
    out = jnp.dot(w_ref[...].astype(jnp.bfloat16), up.astype(jnp.bfloat16),
                  preferred_element_type=jnp.float32)               # (Cout, 4HW)
    o_ref[...] = (out + b_ref[...]).astype(o_ref.dtype)


def _sep_kernel(x_ref, uwt_ref, bmat_ref, bias_ref, o_ref):
    """Separable path with the 1x1 conv folded into the height matrix.
    x_ref   : (Cin*H, W)        input (f32, free NCHW view)
    uwt_ref : (W, 2W)           width interpolation matrix^T, bf16
    bmat_ref: (Cout*2H, Cin*H)  conv-folded height interpolation matrix, bf16
    bias_ref: (Cout*2H, 1)      bias repeated per output row, f32
    o_ref   : (Cout*2H, 2W)     output slab (free NCHW view)
    """
    a = jnp.dot(x_ref[...].astype(jnp.bfloat16), uwt_ref[...],
                preferred_element_type=jnp.float32)                 # (Cin*H, 2W)
    y = jnp.dot(bmat_ref[...], a.astype(jnp.bfloat16),
                preferred_element_type=jnp.float32)                 # (Cout*2H, 2W)
    o_ref[...] = (y + bias_ref[...]).astype(o_ref.dtype)


# --------------------------------------------------------------------------
# Wrapper
# --------------------------------------------------------------------------
def skip_cell_up(x, w, b, *, force_path=None):
    """x: (N, Cin, H, W) NCHW.  w: (Cout, Cin).  b: (Cout,).
    Returns (N, Cout, 2H, 2W) NCHW."""
    n, cin, h, wd = x.shape
    cout = w.shape[0]
    h2, w2 = 2 * h, 2 * wd

    uh = _bilinear_matrix(h, h2)      # (2H, H) np.float32
    uw = _bilinear_matrix(wd, w2)     # (2W, W) np.float32

    if force_path is None:
        use_flat = (h * wd) <= 1024   # keeps KupT <= 8 MiB in bf16 (v7x-safe)
    else:
        use_flat = force_path == "flat"

    w = jnp.asarray(w, jnp.float32)
    b = jnp.asarray(b, jnp.float32)
    params = pltpu.CompilerParams(dimension_semantics=("parallel",))

    if use_flat:
        hw, hw4 = h * wd, 4 * h * wd
        kupt = jnp.asarray(np.kron(uh, uw).T, jnp.bfloat16)        # (HW, 4HW)
        x_flat = x.reshape(n, cin, hw)                             # free view
        out = pl.pallas_call(
            _flat_kernel,
            out_shape=jax.ShapeDtypeStruct((n, cout, hw4), x.dtype),
            grid=(n,),
            in_specs=[
                pl.BlockSpec((pl.Squeezed(), cin, hw), lambda i: (i, 0, 0)),
                pl.BlockSpec((hw, hw4), lambda i: (0, 0)),
                pl.BlockSpec((cout, cin), lambda i: (0, 0)),
                pl.BlockSpec((cout, 1), lambda i: (0, 0)),
            ],
            out_specs=pl.BlockSpec((pl.Squeezed(), cout, hw4),
                                   lambda i: (i, 0, 0)),
            compiler_params=params,
        )(x_flat, kupt, w, b.reshape(cout, 1))
        return out.reshape(n, cout, h2, w2)                        # free view

    # Separable (large-spatial) path: conv folded into the height matrix.
    # TODO(synk): for very large H*W on v7x (bmat or the output block nearing
    # the 32 MiB scoped-VMEM default) add a width-axis grid dimension.
    uwt = jnp.asarray(uw.T, jnp.bfloat16)                          # (W, 2W)
    bmat = jnp.asarray(
        (w[:, None, :, None] * jnp.asarray(uh)[None, :, None, :])
        .reshape(cout * h2, cin * h), jnp.bfloat16)                # (Cout*2H, Cin*H)
    bias_rows = jnp.repeat(b, h2).reshape(cout * h2, 1)            # (Cout*2H, 1)
    x_view = x.reshape(n, cin * h, wd)                             # free view
    out = pl.pallas_call(
        _sep_kernel,
        out_shape=jax.ShapeDtypeStruct((n, cout * h2, w2), x.dtype),
        grid=(n,),
        in_specs=[
            pl.BlockSpec((pl.Squeezed(), cin * h, wd), lambda i: (i, 0, 0)),
            pl.BlockSpec((wd, w2), lambda i: (0, 0)),
            pl.BlockSpec((cout * h2, cin * h), lambda i: (0, 0)),
            pl.BlockSpec((cout * h2, 1), lambda i: (0, 0)),
        ],
        out_specs=pl.BlockSpec((pl.Squeezed(), cout * h2, w2),
                               lambda i: (i, 0, 0)),
        compiler_params=params,
    )(x_view, uwt, bmat, bias_rows)
    return out.reshape(n, cout, h2, w2)                            # free view


# --------------------------------------------------------------------------
# Module wrapper (matches the PyTorch SkipCellUp forward)
# --------------------------------------------------------------------------
class SkipCellUp:
    """y = F.interpolate(x, scale_factor=2, mode='bilinear', align_corners=True)
       return Conv2d(in_channels, out_channels, kernel_size=1)(y)"""

    def __init__(self, in_channels, out_channels, key=None):
        key = jax.random.PRNGKey(0) if key is None else key
        kw, kb = jax.random.split(key)
        bound = 1.0 / np.sqrt(in_channels)        # PyTorch Conv2d default init
        self.w = jax.random.uniform(kw, (out_channels, in_channels),
                                    jnp.float32, -bound, bound)   # (Cout, Cin)
        self.b = jax.random.uniform(kb, (out_channels,), jnp.float32,
                                    -bound, bound)

    def __call__(self, x, *, force_path=None):
        return skip_cell_up(x, self.w, self.b, force_path=force_path)


# --------------------------------------------------------------------------
# main
# --------------------------------------------------------------------------
if __name__ == "__main__":
    key = jax.random.PRNGKey(0)
    kx, kp = jax.random.split(key)
    N, Cin, H, W = 2, 4, 16, 16
    Cout = 8
    x = jax.random.normal(kx, (N, Cin, H, W), jnp.float32)

    cell = SkipCellUp(Cin, Cout, key=kp)
    y = jax.block_until_ready(cell(x))            # flattened (lane-dense) path

    # Pure-JAX reference implementing exactly the PyTorch forward:
    # bilinear x2 upsample (align_corners=True), then 1x1 conv + bias.
    Uh = jnp.asarray(_bilinear_matrix(H, 2 * H), jnp.float32)
    Uw = jnp.asarray(_bilinear_matrix(W, 2 * W), jnp.float32)
    up = jnp.einsum("oh,nchw,pw->ncop", Uh, x, Uw)
    ref = jnp.einsum("ncop,dc->ndop", up, cell.w) + cell.b[None, :, None, None]

    assert y.shape == (N, Cout, 2 * H, 2 * W)
    # Tolerance covers bf16 matmul operands (MXU runs bf16 passes anyway).
    np.testing.assert_allclose(np.asarray(y), np.asarray(ref),
                               rtol=3e-2, atol=3e-2)

    # Also validate the separable (folded-B) fallback path used for larger H*W.
    y2 = jax.block_until_ready(
        skip_cell_up(x, cell.w, cell.b, force_path="separable"))
    np.testing.assert_allclose(np.asarray(y2), np.asarray(ref),
                               rtol=3e-2, atol=3e-2)

    print("KERNEL_OK")
</pallas_src>

<mosaic_0001>
module attributes {stable_mosaic.version = 11 : i64} {
  func.func @_flat_kernel(%arg0: i32, %arg1: memref<1x4x256xf32, #tpu.memory_space<vmem>>, %arg2: memref<256x1024xbf16, #tpu.memory_space<vmem>>, %arg3: memref<8x4xf32, #tpu.memory_space<vmem>>, %arg4: memref<8x1xf32, #tpu.memory_space<vmem>>, %arg5: memref<1x8x1024xf32, #tpu.memory_space<vmem>>) attributes {dimension_semantics = [#tpu.dimension_semantics<parallel>], iteration_bounds = array<i64: 2>, scalar_prefetch = 0 : i64, scratch_operands = 0 : i64, tpu.core_type = #tpu.core_type<tc>, window_params = [{transform_indices = @transform_0, window_bounds = array<i64: 1, 4, 256>}, {pipeline_mode = #tpu.pipeline_mode<synchronous>, transform_indices = @transform_1, window_bounds = array<i64: 256, 1024>}, {pipeline_mode = #tpu.pipeline_mode<synchronous>, transform_indices = @transform_2, window_bounds = array<i64: 8, 4>}, {pipeline_mode = #tpu.pipeline_mode<synchronous>, transform_indices = @transform_3, window_bounds = array<i64: 8, 1>}, {transform_indices = @transform_4, window_bounds = array<i64: 1, 8, 1024>}]} {
    %c0 = arith.constant 0 : index
    %c0_0 = arith.constant 0 : index
    %c0_1 = arith.constant 0 : index
    %0 = vector.load %arg1[%c0, %c0_0, %c0_1] : memref<1x4x256xf32, #tpu.memory_space<vmem>>, vector<1x4x256xf32>
    %1 = vector.shape_cast %0 : vector<1x4x256xf32> to vector<4x256xf32>
    %2 = arith.truncf %1 : vector<4x256xf32> to vector<4x256xbf16>
    %c0_2 = arith.constant 0 : index
    %c0_3 = arith.constant 0 : index
    %3 = vector.load %arg2[%c0_2, %c0_3] : memref<256x1024xbf16, #tpu.memory_space<vmem>>, vector<256x1024xbf16>
    %cst = arith.constant dense<0.000000e+00> : vector<4x1024xf32>
    %4 = tpu.matmul %2, %3, %cst {dimension_numbers = #tpu.dot_dimension_numbers<[1], [0], [0], [1], [0, 0, 1, 1], [], []>} : vector<4x256xbf16>, vector<256x1024xbf16>, vector<4x1024xf32> -> vector<4x1024xf32>
    %c0_4 = arith.constant 0 : index
    %c0_5 = arith.constant 0 : index
    %5 = vector.load %arg3[%c0_4, %c0_5] : memref<8x4xf32, #tpu.memory_space<vmem>>, vector<8x4xf32>
    %6 = arith.truncf %5 : vector<8x4xf32> to vector<8x4xbf16>
    %7 = arith.truncf %4 : vector<4x1024xf32> to vector<4x1024xbf16>
    %cst_6 = arith.constant dense<0.000000e+00> : vector<8x1024xf32>
    %8 = tpu.matmul %6, %7, %cst_6 {dimension_numbers = #tpu.dot_dimension_numbers<[1], [0], [0], [1], [0, 0, 1, 1], [], []>} : vector<8x4xbf16>, vector<4x1024xbf16>, vector<8x1024xf32> -> vector<8x1024xf32>
    %c0_7 = arith.constant 0 : index
    %c0_8 = arith.constant 0 : index
    %9 = vector.load %arg4[%c0_7, %c0_8] : memref<8x1xf32, #tpu.memory_space<vmem>>, vector<8x1xf32>
    %10 = vector.broadcast %9 : vector<8x1xf32> to vector<8x1024xf32>
    %11 = arith.addf %8, %10 : vector<8x1024xf32>
    %c0_9 = arith.constant 0 : index
    %c0_10 = arith.constant 0 : index
    %c0_11 = arith.constant 0 : index
    %12 = vector.load %arg5[%c0_9, %c0_10, %c0_11] : memref<1x8x1024xf32, #tpu.memory_space<vmem>>, vector<1x8x1024xf32>
    %13 = vector.shape_cast %12 : vector<1x8x1024xf32> to vector<8x1024xf32>
    %14 = vector.shape_cast %11 : vector<8x1024xf32> to vector<1x8x1024xf32>
    tpu.vector_store %arg5[%c0_9, %c0_10, %c0_11], %14 {strides = array<i32>} : memref<1x8x1024xf32, #tpu.memory_space<vmem>>, vector<1x8x1024xf32>,
    return
  }
  func.func @transform_0(%arg0: i32) -> (i32, i32, i32) {
    %c0_i32 = arith.constant 0 : i32
    %c0_i32_0 = arith.constant 0 : i32
    %c0_i32_1 = arith.constant 0 : i32
    return %arg0, %c0_i32, %c0_i32_0 : i32, i32, i32
  }
  func.func @transform_1(%arg0: i32) -> (i32, i32) {
    %c0_i32 = arith.constant 0 : i32
    %c0_i32_0 = arith.constant 0 : i32
    %c0_i32_1 = arith.constant 0 : i32
    return %c0_i32, %c0_i32_0 : i32, i32
  }
  func.func @transform_2(%arg0: i32) -> (i32, i32) {
    %c0_i32 = arith.constant 0 : i32
    %c0_i32_0 = arith.constant 0 : i32
    %c0_i32_1 = arith.constant 0 : i32
    return %c0_i32, %c0_i32_0 : i32, i32
  }
  func.func @transform_3(%arg0: i32) -> (i32, i32) {
    %c0_i32 = arith.constant 0 : i32
    %c0_i32_0 = arith.constant 0 : i32
    %c0_i32_1 = arith.constant 0 : i32
    return %c0_i32, %c0_i32_0 : i32, i32
  }
  func.func @transform_4(%arg0: i32) -> (i32, i32, i32) {
    %c0_i32 = arith.constant 0 : i32
    %c0_i32_0 = arith.constant 0 : i32
    %c0_i32_1 = arith.constant 0 : i32
    return %arg0, %c0_i32, %c0_i32_0 : i32, i32, i32
  }
}

</mosaic_0001>

<bundles_post_ra>
// kernel: tpu_custom_call.1
= control target key start
LH: loop header
LB: loop body
LE: loop exit
PB: predicated region body
PF: predicated region fallthrough
CT: control target
= control target key end

     0   :  { %9 = vsyncpa [#allocation3], 0  ;;  %s1939_s0 = inlined_call_operand.vmem [shape: f32[2,4,256], index: 0, kind: input, shape index: {}]   ;;  %s1940_s1 = inlined_call_operand.hbm [shape: bf16[256,1024], index: 1, kind: input, shape index: {}]   ;;  %s1941_s2 = inlined_call_operand.vmem [shape: f32[8,4], index: 2, kind: input, shape index: {}]   ;;  %s1942_s3 = inlined_call_operand.vmem [shape: f32[8,1], index: 3, kind: input, shape index: {}]   ;;  %s1943_s4 = inlined_call_operand.hbm [shape: f32[2,8,1024], index: 4, kind: output, shape index: {}]  }
   0x1   :  { %10 = vsyncpa [#allocation4], 0 }
   0x2   :  { %12 = vsyncpa [#allocation4 + $0x1], 0  ;;  %s1782_s15 = smov 0   ;;  %s1784_s16 = smov 0  }
   0x3   :  { %s1786_s17 = smov 0   ;;  %s1788_s18 = smov 0  }
   0x4 LB: > { %s1803_s19 = sadd.s32 4294967295, %s1750_s18   ;;  %s1453_s20 = sadd.s32 4294967294, %s1750_s18   ;;  %s1750_s18 = sphi %s1788_s18, %s1951_s18   ;;  %s1746_s17 = sphi %s1786_s17, %s1950_s17   ;;  %s1742_s16 = sphi %s1784_s16, %s1949_s16   ;;  %s1738_s15 = sphi %s1782_s15, %s1948_s15  }
   0x5   : > { %s1807_s21 = sadd.s32 1, %s1750_s18   ;;  %s114_s22 = sadd.s32 1, %s1746_s17 }
   0x6   : > { %s111_s23 = ssub.s32 %s1750_s18, %s1807_s21  ;;  %p124_p0 = scmp.ne.s32.totalorder %s1746_s17, %s1742_s16 }
   0x7   : > { %p112_p1 = scmp.eq.s32.totalorder %s111_s23, 0  ;;  %p125_p2 = scmp.eq.s32.totalorder %s1803_s19, 1 }
   0x8   : > { %p130_p3 = scmp.ne.s32.totalorder %s1742_s16, %s1738_s15  ;;  %p131_p4 = scmp.eq.s32.totalorder %s1453_s20, 1 }
   0x9   : > { %s1818_s24 = scalar_select %p112_p1, %s1746_s17, %s114_s22  }
   0xa   : > { %p1820_p5 = por %p125_p2, %p124_p0  ;;  %p1824_p6 = por %p131_p4, %p130_p3 }
   0xb   : > { %p1454_p7 = scmp.ge.s32.totalorder %s1750_s18, 1  ;;  %p138_p8 = scmp.lt.s32.totalorder %s1750_s18, 3 }
   0xc   : > { %s1945_s26 = scalar_select %p1824_p6, 1, 0 }
   0xd   : > { %p1619_p9 = scmp.eq.s32.totalorder %s1803_s19, 0  ;;  %p1831_p10 = pnand %p1454_p7, %p138_p8 }
   0xe   : > { %s1752_s28 = smov [#allocation2]  }
   0xf   : > { %s150_s29 = sshll.u32 %s1752_s28, 4  ;;  %p1611_p11 = pneg %p1831_p10  ;;  %s151_s29 = int_to_ptr.vmem [resolvable:$true] %s150_s29 }
  0x10   : > { %s1671_s30 = scalar_lea.vmem %s151_s29, 16384  ;;  %p1679_p3 = scmp.lt.s32.totalorder %s151_s29, %s151_s29 }
  0x11   : > { %p1612_p12 = pnand %p1619_p9, %p1611_p11  ;;  %p1672_p0 = scmp.ne.s32.totalorder %s151_s29, %s1671_s30 }
  0x12   : > { %p1680_p4 = scmp.lt.s32.totalorder %s1671_s30, %s1671_s30 }
  0x13   : > { %p1662_p13 = pneg %p1612_p12 }
  0x14   : > { %p1681_p6 = por %p1680_p4, %p1679_p3 }
  0x15   : > { %p1674_p1 = pnand %p1672_p0, %p1662_p13 }
  0x17   : > { %p1675_p2 = pneg %p1674_p1 }
  0x19   : > { %p1682_p7 = pnand %p1681_p6, %p1675_p2 }
  0x1b   : > { %1685 = shalt.err (!%p1682_p7)
}
  0x1c   : > { %s1753_s5 = smov 512   ;;  %s1754_s6 = smov 32  }
  0x1d   : > { %1614 = dma.hbm_to_vmem [thread:$0]  (!%p1612_p12), %s1940_s1, 16384, %s151_s29, [#allocation3], %s1753_s5, %s1753_s5, %s1754_s6  }
  0x1e   : > { %180 = sbr.rel (%p1831_p10) target bundleno = 580 (0x244), region = 36 }
  0x23   : > { %1729 = dma.done.wait (%p1619_p9), [#allocation3], 16384  }
  0x24   : > { %1731 = vsyncadd (%p1619_p9), [#allocation3], 4294950912  ;;  %v274_v0 = vld [vmem:[#allocation2 + $0x1c0] sm:$0xff]  ;;  %v275_v2 = vld [vmem:[#allocation2 + $0x1c8] sm:$0xff]  ;;  %p206_p6 = scmp.lt.s32.totalorder %s1803_s19, 1  ;;  %vm1170_vm0 = vcmask 1041408  }
  0x25   : > { %v278_v1 = vld [vmem:[#allocation2 + $0x1e0] sm:$0xff]  ;;  %v279_v4 = vld [vmem:[#allocation2 + $0x1e8] sm:$0xff]  ;;  %vm1166_vm1 = vcmask 31744   ;;  %s203_s27 = sand.u32 1, %s1742_s16   ;;  %s1604_s30 = sshll.u32 %s1803_s19, 10 }
  0x26   : > { %v1519_v3 = vcombine.high %v274_v0, %v278_v1  ;;  %v1518_v5 = vcombine.low %v274_v0, %v278_v1  ;;  %v266_v6 = vld [vmem:[#allocation2 + $0x180] sm:$0xff]  ;;  %v1521_v8 = vcombine.high %v275_v2, %v279_v4  ;;  %v1520_v9 = vcombine.low %v275_v2, %v279_v4  ;;  %v267_v11 = vld [vmem:[#allocation2 + $0x188] sm:$0xff]  ;;  %s207_s9 = scalar_select %p206_p6, %s1803_s19, 1 }
  0x27   : > { %v270_v7 = vld [vmem:[#allocation2 + $0x1a0] sm:$0xff]  ;;  %v271_v12 = vld [vmem:[#allocation2 + $0x1a8] sm:$0xff]  ;;  %s1459_s28 = sshll.u32 %s203_s27, 6  ;;  %s1896_s8 = scalar_lea.hbm %s1943_s4, %s1604_s30 }
  0x28   : > { %v1511_v10 = vcombine.high %v266_v6, %v270_v7  ;;  %v258_v13 = vld [vmem:[#allocation2 + $0x140] sm:$0xff]  ;;  %986 = vmatprep.subr.bf16.mxu0 %v1519_v3  ;;  %v1513_v14 = vcombine.high %v267_v11, %v271_v12  ;;  %v259_v16 = vld [vmem:[#allocation2 + $0x148] sm:$0xff]  ;;  %1027 = vmatprep.subr.bf16.mxu1 %v1521_v8  ;;  %v1510_v18 = vcombine.low %v266_v6, %v270_v7  ;;  %s1603_s10 = sshll.u32 %s207_s9, 3  ;;  %s205_s29 = scalar_lea.vmem [#allocation5], %s1459_s28 }
  0x29   : > { %v262_v15 = vld [vmem:[#allocation2 + $0x160] sm:$0xff]  ;;  %v263_v17 = vld [vmem:[#allocation2 + $0x168] sm:$0xff]  ;;  %987 = vmatpush1.bf16.msra.mxu0 %v1518_v5  ;;  %1028 = vmatpush1.bf16.msra.mxu1 %v1520_v9  ;;  %v1512_v19 = vcombine.low %v267_v11, %v271_v12  ;;  %s210_s13 = scalar_lea.vmem %s1939_s0, %s1603_s10  ;;  %s1382_s5 = sshll.u32 %s205_s29, 4  ;;  %s1898_s5 = int_to_ptr.vmem [resolvable:$true] %s1382_s5 }
  0x2a   : > { %988 = vmatprep.subr.bf16.mxu0 %v1511_v10  ;;  %v1503_v20 = vcombine.high %v258_v13, %v262_v15  ;;  %1029 = vmatprep.subr.bf16.mxu1 %v1513_v14  ;;  %v1505_v21 = vcombine.high %v259_v16, %v263_v17  ;;  %v250_v22 = vld [vmem:[#allocation2 + $0x100] sm:$0xff]  ;;  %v251_v24 = vld [vmem:[#allocation2 + $0x108] sm:$0xff]  ;;  %v1502_v26 = vcombine.low %v258_v13, %v262_v15  ;;  %s1368_s19 = scalar_lea.sflag [#allocation4], %s203_s27  ;;  %s1686_s9 = scalar_lea.vmem %s1898_s5, 1024 }
  0x2b   : > { %v254_v23 = vld [vmem:[#allocation2 + $0x120] sm:$0xff]  ;;  %v255_v25 = vld [vmem:[#allocation2 + $0x128] sm:$0xff]  ;;  %v1504_v27 = vcombine.low %v259_v16, %v263_v17  ;;  %p1687_p8 = scmp.ne.s32.totalorder %s1898_s5, %s1686_s9  ;;  %s1756_s10 = smov [#allocation5]  }
  0x2c   : > { %v1495_v28 = vcombine.high %v250_v22, %v254_v23  ;;  %v1497_v29 = vcombine.high %v251_v24, %v255_v25  ;;  %v242_v30 = vld [vmem:[#allocation2 + $0xc0] sm:$0xff]  ;;  %v243_v32 = vld [vmem:[#allocation2 + $0xc8] sm:$0xff]  ;;  %v1494_v34 = vcombine.low %v250_v22, %v254_v23  ;;  %v1496_v35 = vcombine.low %v251_v24, %v255_v25  ;;  %s1690_s11 = sshll.u32 %s1756_s10, 4  ;;  %s1691_s11 = int_to_ptr.vmem [resolvable:$false] %s1690_s11 }
  0x2d   : > { %989 = vmatpush1.bf16.msra.mxu0 %v1510_v18  ;;  %1030 = vmatpush1.bf16.msra.mxu1 %v1512_v19  ;;  %v246_v31 = vld [vmem:[#allocation2 + $0xe0] sm:$0xff]  ;;  %v247_v33 = vld [vmem:[#allocation2 + $0xe8] sm:$0xff]  ;;  %p1688_p9 = pnand %p1687_p8, %p1820_p5  ;;  %s1692_s12 = scalar_lea.vmem %s1691_s11, 2048 }
  0x2e   : > { %990 = vmatprep.subr.bf16.mxu0 %v1503_v20  ;;  %1031 = vmatprep.subr.bf16.mxu1 %v1505_v21  ;;  %v1487_v36 = vcombine.high %v242_v30, %v246_v31  ;;  %v1489_v37 = vcombine.high %v243_v32, %v247_v33  ;;  %v234_v38 = vld [vmem:[#allocation2 + $0x80] sm:$0xff]  ;;  %v235_v40 = vld [vmem:[#allocation2 + $0x88] sm:$0xff]  ;;  %v1486_v42 = vcombine.low %v242_v30, %v246_v31  ;;  %p1693_p11 = scmp.lt.s32.totalorder %s1898_s5, %s1691_s11  ;;  %p1694_p12 = scmp.lt.s32.totalorder %s1692_s12, %s1686_s9 }
  0x2f   : > { %v238_v39 = vld [vmem:[#allocation2 + $0xa0] sm:$0xff]  ;;  %v239_v41 = vld [vmem:[#allocation2 + $0xa8] sm:$0xff]  ;;  %v1488_v43 = vcombine.low %v243_v32, %v247_v33  ;;  %p1689_p10 = pneg %p1688_p9 }
  0x30   : > { %v1479_v44 = vcombine.high %v234_v38, %v238_v39  ;;  %v1481_v45 = vcombine.high %v235_v40, %v239_v41  ;;  %v226_v46 = vld [vmem:[#allocation2 + $0x40] sm:$0xff]  ;;  %v227_v48 = vld [vmem:[#allocation2 + $0x48] sm:$0xff]  ;;  %v1478_v50 = vcombine.low %v234_v38, %v238_v39  ;;  %v1480_v51 = vcombine.low %v235_v40, %v239_v41  ;;  %p1695_p13 = por %p1694_p12, %p1693_p11 }
  0x31   : > { %991 = vmatpush1.bf16.msra.mxu0 %v1502_v26  ;;  %1032 = vmatpush1.bf16.msra.mxu1 %v1504_v27  ;;  %v230_v47 = vld [vmem:[#allocation2 + $0x60] sm:$0xff]  ;;  %v231_v49 = vld [vmem:[#allocation2 + $0x68] sm:$0xff] }
  0x32   : > { %992 = vmatprep.subr.bf16.mxu0 %v1495_v28  ;;  %1033 = vmatprep.subr.bf16.mxu1 %v1497_v29  ;;  %v1471_v52 = vcombine.high %v226_v46, %v230_v47  ;;  %v1853_v53 = vld [vmem:[%s210_s13] sm:$0xff]  ;;  %v1473_v54 = vcombine.high %v227_v48, %v231_v49  ;;  %v219_v58 = vld [vmem:[#allocation2 + $0x8] sm:$0xff]  ;;  %v1470_v60 = vcombine.low %v226_v46, %v230_v47  ;;  %p1696_p0 = pnand %p1695_p13, %p1689_p10 }
  0x33   : > { %v218_v55 = vld [vmem:[#allocation2] sm:$0xff]  ;;  %v214_v57 = vcombine.high %v1853_v53, %v1853_v53  ;;  %v223_v59 = vld [vmem:[#allocation2 + $0x28] sm:$0xff]  ;;  %v1472_v62 = vcombine.low %v227_v48, %v231_v49 }
  0x34   : > { %v222_v56 = vld [vmem:[#allocation2 + $0x20] sm:$0xff]  ;;  %v1465_v0 = vcombine.high %v219_v58, %v223_v59  ;;  %v339_v3 = vld [vmem:[#allocation2 + $0x3c8] sm:$0xff]  ;;  %v1464_v6 = vcombine.low %v219_v58, %v223_v59 }
  0x35   : > { %993 = vmatpush1.bf16.msra.mxu0 %v1494_v34  ;;  %1034 = vmatpush1.bf16.msra.mxu1 %v1496_v35  ;;  %v1857_v61 = vpack.c.bf16 %v214_v57, %v214_v57  ;;  %v1463_v63 = vcombine.high %v218_v55, %v222_v56  ;;  %v338_v1 = vld [vmem:[#allocation2 + $0x3c0] sm:$0xff]  ;;  %v343_v4 = vld [vmem:[#allocation2 + $0x3e8] sm:$0xff]  ;;  %v1462_v5 = vcombine.low %v218_v55, %v222_v56 }
  0x36   : > { %994 = vmatprep.subr.bf16.mxu0 %v1487_v36  ;;  %1035 = vmatprep.subr.bf16.mxu1 %v1489_v37  ;;  %v342_v2 = vld [vmem:[#allocation2 + $0x3e0] sm:$0xff]  ;;  %v1585_v8 = vcombine.high %v339_v3, %v343_v4  ;;  %v331_v11 = vld [vmem:[#allocation2 + $0x388] sm:$0xff]  ;;  %v1584_v14 = vcombine.low %v339_v3, %v343_v4  ;;  %v276_v3 = vld [vmem:[#allocation2 + $0x1d0] sm:$0xff] }
  0x37   : > { %1018 = vmatprep.mubr.bf16.mxu0 %v1857_v61  ;;  %1059 = vmatprep.mubr.bf16.mxu1 %v1857_v61  ;;  %v1583_v7 = vcombine.high %v338_v1, %v342_v2  ;;  %v330_v9 = vld [vmem:[#allocation2 + $0x380] sm:$0xff]  ;;  %v335_v12 = vld [vmem:[#allocation2 + $0x3a8] sm:$0xff]  ;;  %v1582_v13 = vcombine.low %v338_v1, %v342_v2  ;;  %v280_v4 = vld [vmem:[#allocation2 + $0x1f0] sm:$0xff] }
  0x38   : > { %v334_v10 = vld [vmem:[#allocation2 + $0x3a0] sm:$0xff]  ;;  %v1577_v16 = vcombine.high %v331_v11, %v335_v12  ;;  %v323_v19 = vld [vmem:[#allocation2 + $0x348] sm:$0xff]  ;;  %v1576_v22 = vcombine.low %v331_v11, %v335_v12  ;;  %v268_v11 = vld [vmem:[#allocation2 + $0x190] sm:$0xff] }
  0x39   : > { %995 = vmatpush1.bf16.msra.mxu0 %v1486_v42  ;;  %1036 = vmatpush1.bf16.msra.mxu1 %v1488_v43  ;;  %v1575_v15 = vcombine.high %v330_v9, %v334_v10  ;;  %v322_v17 = vld [vmem:[#allocation2 + $0x340] sm:$0xff]  ;;  %v327_v20 = vld [vmem:[#allocation2 + $0x368] sm:$0xff]  ;;  %v1574_v21 = vcombine.low %v330_v9, %v334_v10  ;;  %v1523_v9 = vcombine.high %v276_v3, %v280_v4  ;;  %v272_v12 = vld [vmem:[#allocation2 + $0x1b0] sm:$0xff] }
  0x3a   : > { %996 = vmatprep.subr.bf16.mxu0 %v1479_v44  ;;  %1037 = vmatprep.subr.bf16.mxu1 %v1481_v45  ;;  %v326_v18 = vld [vmem:[#allocation2 + $0x360] sm:$0xff]  ;;  %v1569_v24 = vcombine.high %v323_v19, %v327_v20  ;;  %v315_v27 = vld [vmem:[#allocation2 + $0x308] sm:$0xff]  ;;  %v1568_v30 = vcombine.low %v323_v19, %v327_v20  ;;  %v260_v20 = vld [vmem:[#allocation2 + $0x150] sm:$0xff] }
  0x3b   : > { %v1567_v23 = vcombine.high %v322_v17, %v326_v18  ;;  %v314_v25 = vld [vmem:[#allocation2 + $0x300] sm:$0xff]  ;;  %v319_v28 = vld [vmem:[#allocation2 + $0x328] sm:$0xff]  ;;  %v1566_v29 = vcombine.low %v322_v17, %v326_v18  ;;  %v1515_v18 = vcombine.high %v268_v11, %v272_v12 }
  0x3c   : > { %v318_v26 = vld [vmem:[#allocation2 + $0x320] sm:$0xff]  ;;  %v1561_v32 = vcombine.high %v315_v27, %v319_v28  ;;  %v307_v35 = vld [vmem:[#allocation2 + $0x2c8] sm:$0xff]  ;;  %v1560_v38 = vcombine.low %v315_v27, %v319_v28  ;;  %v252_v27 = vld [vmem:[#allocation2 + $0x110] sm:$0xff] }
  0x3d   : > { %997 = vmatpush1.bf16.msra.mxu0 %v1478_v50  ;;  %1038 = vmatpush1.bf16.msra.mxu1 %v1480_v51  ;;  %v1559_v31 = vcombine.high %v314_v25, %v318_v26  ;;  %v306_v33 = vld [vmem:[#allocation2 + $0x2c0] sm:$0xff]  ;;  %v311_v36 = vld [vmem:[#allocation2 + $0x2e8] sm:$0xff]  ;;  %v1558_v37 = vcombine.low %v314_v25, %v318_v26  ;;  %v256_v28 = vld [vmem:[#allocation2 + $0x130] sm:$0xff] }
  0x3e   : > { %998 = vmatprep.subr.bf16.mxu0 %v1471_v52  ;;  %1039 = vmatprep.subr.bf16.mxu1 %v1473_v54  ;;  %v310_v34 = vld [vmem:[#allocation2 + $0x2e0] sm:$0xff]  ;;  %v1553_v40 = vcombine.high %v307_v35, %v311_v36  ;;  %v299_v43 = vld [vmem:[#allocation2 + $0x288] sm:$0xff]  ;;  %v1552_v46 = vcombine.low %v307_v35, %v311_v36  ;;  %v244_v35 = vld [vmem:[#allocation2 + $0xd0] sm:$0xff] }
  0x3f   : > { %v1551_v39 = vcombine.high %v306_v33, %v310_v34  ;;  %v298_v41 = vld [vmem:[#allocation2 + $0x280] sm:$0xff]  ;;  %v303_v44 = vld [vmem:[#allocation2 + $0x2a8] sm:$0xff]  ;;  %v1550_v45 = vcombine.low %v306_v33, %v310_v34  ;;  %v1499_v33 = vcombine.high %v252_v27, %v256_v28  ;;  %v248_v36 = vld [vmem:[#allocation2 + $0xf0] sm:$0xff] }
  0x40   : > { %v302_v42 = vld [vmem:[#allocation2 + $0x2a0] sm:$0xff]  ;;  %v1545_v48 = vcombine.high %v299_v43, %v303_v44  ;;  %v291_v51 = vld [vmem:[#allocation2 + $0x248] sm:$0xff]  ;;  %v1544_v55 = vcombine.low %v299_v43, %v303_v44  ;;  %v240_v43 = vld [vmem:[#allocation2 + $0xb0] sm:$0xff] }
  0x41   : > { %999 = vmatpush1.bf16.msra.mxu0 %v1470_v60  ;;  %1040 = vmatpush1.bf16.msra.mxu1 %v1472_v62  ;;  %v1543_v47 = vcombine.high %v298_v41, %v302_v42  ;;  %v290_v49 = vld [vmem:[#allocation2 + $0x240] sm:$0xff]  ;;  %v295_v52 = vld [vmem:[#allocation2 + $0x268] sm:$0xff]  ;;  %v1542_v54 = vcombine.low %v298_v41, %v302_v42  ;;  %v1491_v41 = vcombine.high %v244_v35, %v248_v36  ;;  %v236_v42 = vld [vmem:[#allocation2 + $0x90] sm:$0xff] }
  0x42   : > { %1000 = vmatprep.subr.bf16.mxu0 %v1463_v63  ;;  %1041 = vmatprep.subr.bf16.mxu1 %v1465_v0  ;;  %v294_v50 = vld [vmem:[#allocation2 + $0x260] sm:$0xff]  ;;  %v1537_v57 = vcombine.high %v291_v51, %v295_v52  ;;  %v283_v60 = vld [vmem:[#allocation2 + $0x208] sm:$0xff]  ;;  %v1536_v0 = vcombine.low %v291_v51, %v295_v52  ;;  %v237_v44 = vld [vmem:[#allocation2 + $0x98] sm:$0xff] }
  0x43   : > { %v1535_v56 = vcombine.high %v290_v49, %v294_v50  ;;  %v282_v58 = vld [vmem:[#allocation2 + $0x200] sm:$0xff]  ;;  %v287_v62 = vld [vmem:[#allocation2 + $0x228] sm:$0xff]  ;;  %v1534_v63 = vcombine.low %v290_v49, %v294_v50  ;;  %v228_v50 = vld [vmem:[#allocation2 + $0x50] sm:$0xff] }
  0x44   : > { %v286_v59 = vld [vmem:[#allocation2 + $0x220] sm:$0xff]  ;;  %v1529_v2 = vcombine.high %v283_v60, %v287_v62  ;;  %v232_v51 = vld [vmem:[#allocation2 + $0x70] sm:$0xff]  ;;  %v229_v52 = vld [vmem:[#allocation2 + $0x58] sm:$0xff] }
  0x45   : > { %1001 = vmatpush1.bf16.msra.mxu0 %v1462_v5  ;;  %1042 = vmatpush1.bf16.msra.mxu1 %v1464_v6  ;;  %v1527_v1 = vcombine.high %v282_v58, %v286_v59  ;;  %v277_v5 = vld [vmem:[#allocation2 + $0x1d8] sm:$0xff] }
  0x46   : > { %1002 = vmatprep.subr.bf16.mxu0 %v1583_v7  ;;  %1043 = vmatprep.subr.bf16.mxu1 %v1585_v8  ;;  %v281_v6 = vld [vmem:[#allocation2 + $0x1f8] sm:$0xff]  ;;  %v1526_v7 = vcombine.low %v282_v58, %v286_v59  ;;  %v1528_v8 = vcombine.low %v283_v60, %v287_v62  ;;  %v220_v59 = vld [vmem:[#allocation2 + $0x10] sm:$0xff] }
  0x47   : > { %v1525_v10 = vcombine.high %v277_v5, %v281_v6  ;;  %v1524_v17 = vcombine.low %v277_v5, %v281_v6  ;;  %v224_v60 = vld [vmem:[#allocation2 + $0x30] sm:$0xff]  ;;  %v221_v62 = vld [vmem:[#allocation2 + $0x18] sm:$0xff] }
  0x48   : > { %v344_v5 = vld [vmem:[#allocation2 + $0x3f0] sm:$0xff]  ;;  %v341_v6 = vld [vmem:[#allocation2 + $0x3d8] sm:$0xff] }
  0x49   : > { %1003 = vmatpush2.bf16.msra.mxu0 %v1582_v13  ;;  %1044 = vmatpush2.bf16.msra.mxu1 %v1584_v14  ;;  %v1863_v13 = vpack.c.bf16 %v1853_v53, %v1853_v53  ;;  %v269_v14 = vld [vmem:[#allocation2 + $0x198] sm:$0xff]  ;;  %v1514_v53 = vcombine.low %v268_v11, %v272_v12  ;;  %v332_v12 = vld [vmem:[#allocation2 + $0x390] sm:$0xff] }
  0x4a   : > { %1004 = vmatprep.subr.bf16.mxu0 %v1575_v15  ;;  %1045 = vmatprep.subr.bf16.mxu1 %v1577_v16  ;;  %v273_v15 = vld [vmem:[#allocation2 + $0x1b8] sm:$0xff]  ;;  %v1522_v16 = vcombine.low %v276_v3, %v280_v4  ;;  %v340_v4 = vld [vmem:[#allocation2 + $0x3d0] sm:$0xff] }
  0x4b   : > { %v1517_v19 = vcombine.high %v269_v14, %v273_v15 }
  0x4d   : > { %1005 = vmatpush2.bf16.msra.mxu0 %v1574_v21  ;;  %1046 = vmatpush2.bf16.msra.mxu1 %v1576_v22  ;;  %v264_v21 = vld [vmem:[#allocation2 + $0x170] sm:$0xff]  ;;  %v261_v22 = vld [vmem:[#allocation2 + $0x158] sm:$0xff] }
  0x4e   : > { %1006 = vmatprep.subr.bf16.mxu0 %v1567_v23  ;;  %1047 = vmatprep.subr.bf16.mxu1 %v1569_v24  ;;  %v265_v23 = vld [vmem:[#allocation2 + $0x178] sm:$0xff]  ;;  %v1516_v24 = vcombine.low %v269_v14, %v273_v15  ;;  %v1507_v25 = vcombine.high %v260_v20, %v264_v21  ;;  %v336_v14 = vld [vmem:[#allocation2 + $0x3b0] sm:$0xff] }
  0x4f   : > { %v1509_v26 = vcombine.high %v261_v22, %v265_v23  ;;  %v333_v15 = vld [vmem:[#allocation2 + $0x398] sm:$0xff] }
  0x51   : > { %1007 = vmatpush2.bf16.msra.mxu0 %v1566_v29  ;;  %1048 = vmatpush2.bf16.msra.mxu1 %v1568_v30  ;;  %v253_v29 = vld [vmem:[#allocation2 + $0x118] sm:$0xff] }
  0x52   : > { %1008 = vmatprep.subr.bf16.mxu0 %v1559_v31  ;;  %1049 = vmatprep.subr.bf16.mxu1 %v1561_v32  ;;  %v257_v30 = vld [vmem:[#allocation2 + $0x138] sm:$0xff]  ;;  %v1506_v31 = vcombine.low %v260_v20, %v264_v21  ;;  %v1508_v32 = vcombine.low %v261_v22, %v265_v23  ;;  %v324_v21 = vld [vmem:[#allocation2 + $0x350] sm:$0xff] }
  0x53   : > { %v1501_v34 = vcombine.high %v253_v29, %v257_v30  ;;  %v328_v22 = vld [vmem:[#allocation2 + $0x370] sm:$0xff]  ;;  %v325_v23 = vld [vmem:[#allocation2 + $0x358] sm:$0xff] }
  0x55   : > { %1009 = vmatpush2.bf16.msra.mxu0 %v1558_v37  ;;  %1050 = vmatpush2.bf16.msra.mxu1 %v1560_v38  ;;  %v245_v37 = vld [vmem:[#allocation2 + $0xd8] sm:$0xff] }
  0x56   : > { %1010 = vmatprep.subr.bf16.mxu0 %v1551_v39  ;;  %1051 = vmatprep.subr.bf16.mxu1 %v1553_v40  ;;  %v249_v38 = vld [vmem:[#allocation2 + $0xf8] sm:$0xff]  ;;  %v1498_v39 = vcombine.low %v252_v27, %v256_v28  ;;  %v1500_v40 = vcombine.low %v253_v29, %v257_v30  ;;  %v316_v28 = vld [vmem:[#allocation2 + $0x310] sm:$0xff] }
  0x57   : > { %v320_v29 = vld [vmem:[#allocation2 + $0x330] sm:$0xff]  ;;  %v317_v30 = vld [vmem:[#allocation2 + $0x318] sm:$0xff] }
  0x59   : > { %1011 = vmatpush2.bf16.msra.mxu0 %v1550_v45  ;;  %1052 = vmatpush2.bf16.msra.mxu1 %v1552_v46  ;;  %v241_v45 = vld [vmem:[#allocation2 + $0xb8] sm:$0xff]  ;;  %v1490_v46 = vcombine.low %v244_v35, %v248_v36  ;;  %v308_v36 = vld [vmem:[#allocation2 + $0x2d0] sm:$0xff] }
  0x5a   : > { %1012 = vmatprep.subr.bf16.mxu0 %v1543_v47  ;;  %1053 = vmatprep.subr.bf16.mxu1 %v1545_v48  ;;  %v1492_v47 = vcombine.low %v245_v37, %v249_v38  ;;  %v1483_v48 = vcombine.high %v236_v42, %v240_v43  ;;  %v1485_v49 = vcombine.high %v237_v44, %v241_v45 }
  0x5d   : > { %1013 = vmatpush2.bf16.msra.mxu0 %v1542_v54  ;;  %1054 = vmatpush2.bf16.msra.mxu1 %v1544_v55  ;;  %v233_v54 = vld [vmem:[#allocation2 + $0x78] sm:$0xff]  ;;  %v1482_v55 = vcombine.low %v236_v42, %v240_v43  ;;  %v300_v43 = vld [vmem:[#allocation2 + $0x290] sm:$0xff] }
  0x5e   : > { %1014 = vmatprep.subr.bf16.mxu0 %v1535_v56  ;;  %1055 = vmatprep.subr.bf16.mxu1 %v1537_v57  ;;  %v1484_v56 = vcombine.low %v237_v44, %v241_v45  ;;  %v1475_v57 = vcombine.high %v228_v50, %v232_v51  ;;  %v1477_v58 = vcombine.high %v229_v52, %v233_v54  ;;  %v304_v44 = vld [vmem:[#allocation2 + $0x2b0] sm:$0xff]  ;;  %v301_v45 = vld [vmem:[#allocation2 + $0x298] sm:$0xff] }
  0x61   : > { %1015 = vmatpush2.bf16.msra.mxu0 %v1534_v63  ;;  %1056 = vmatpush2.bf16.msra.mxu1 %v1536_v0  ;;  %v225_v63 = vld [vmem:[#allocation2 + $0x38] sm:$0xff]  ;;  %v1474_v0 = vcombine.low %v228_v50, %v232_v51  ;;  %v292_v51 = vld [vmem:[#allocation2 + $0x250] sm:$0xff] }
  0x62   : > { %1016 = vmatprep.subr.bf16.mxu0 %v1527_v1  ;;  %1057 = vmatprep.subr.bf16.mxu1 %v1529_v2  ;;  %v1476_v1 = vcombine.low %v229_v52, %v233_v54  ;;  %v1467_v2 = vcombine.high %v220_v59, %v224_v60  ;;  %v1469_v3 = vcombine.high %v221_v62, %v225_v63  ;;  %v296_v52 = vld [vmem:[#allocation2 + $0x270] sm:$0xff]  ;;  %v293_v54 = vld [vmem:[#allocation2 + $0x258] sm:$0xff] }
  0x65   : > { %1017 = vmatpush2.bf16.msra.mxu0 %v1526_v7  ;;  %1058 = vmatpush2.bf16.msra.mxu1 %v1528_v8  ;;  %v345_v7 = vld [vmem:[#allocation2 + $0x3f8] sm:$0xff]  ;;  %v1466_v8 = vcombine.low %v220_v59, %v224_v60  ;;  %v284_v60 = vld [vmem:[#allocation2 + $0x210] sm:$0xff] }
  0x66   : > { %1068 = vmatprep.subr.bf16.mxu0 %v1523_v9  ;;  %1109 = vmatprep.subr.bf16.mxu1 %v1525_v10  ;;  %v1468_v9 = vcombine.low %v221_v62, %v225_v63  ;;  %v1587_v10 = vcombine.high %v340_v4, %v344_v5  ;;  %v1589_v11 = vcombine.high %v341_v6, %v345_v7  ;;  %v288_v62 = vld [vmem:[#allocation2 + $0x230] sm:$0xff]  ;;  %v285_v63 = vld [vmem:[#allocation2 + $0x218] sm:$0xff] }
  0x68   : > { %1019 = vmatmul.mubr.bf16.vlgmr.msra.gmra.mxu0 %v1863_v13  ;;  %1060 = vmatmul.mubr.bf16.vlgmr.msra.gmra.mxu1 %v1863_v13 }
  0x69   : > { %1069 = vmatpush1.bf16.msra.mxu0 %v1522_v16  ;;  %1110 = vmatpush1.bf16.msra.mxu1 %v1524_v17  ;;  %v337_v16 = vld [vmem:[#allocation2 + $0x3b8] sm:$0xff]  ;;  %v1586_v17 = vcombine.low %v340_v4, %v344_v5  ;;  %v1530_v5 = vcombine.low %v284_v60, %v288_v62 }
  0x6a   : > { %1070 = vmatprep.subr.bf16.mxu0 %v1515_v18  ;;  %1111 = vmatprep.subr.bf16.mxu1 %v1517_v19  ;;  %v1588_v18 = vcombine.low %v341_v6, %v345_v7  ;;  %v1579_v19 = vcombine.high %v332_v12, %v336_v14  ;;  %v1581_v20 = vcombine.high %v333_v15, %v337_v16  ;;  %v1755_v7 = vmov 0  }
  0x6b   : > { %1100 = vmatprep.mubr.bf16.mxu0 %v1857_v61  ;;  %1141 = vmatprep.mubr.bf16.mxu1 %v1857_v61  ;;  %v1493_v61 = vcombine.high %v245_v37, %v249_v38  ;;  %v312_v37 = vld [vmem:[#allocation2 + $0x2f0] sm:$0xff]  ;;  %v309_v38 = vld [vmem:[#allocation2 + $0x2d8] sm:$0xff] }
  0x6c   : > { %1658 = vset.pattern.permute.xlu0 %v1755_v7 }
  0x6d   : > { %1071 = vmatpush1.bf16.msra.mxu0 %v1514_v53  ;;  %1112 = vmatpush1.bf16.msra.mxu1 %v1516_v24  ;;  %v329_v53 = vld [vmem:[#allocation2 + $0x378] sm:$0xff]  ;;  %v1578_v24 = vcombine.low %v332_v12, %v336_v14 }
  0x6e   : > { %1072 = vmatprep.subr.bf16.mxu0 %v1507_v25  ;;  %1113 = vmatprep.subr.bf16.mxu1 %v1509_v26  ;;  %v1580_v25 = vcombine.low %v333_v15, %v337_v16  ;;  %v1571_v26 = vcombine.high %v324_v21, %v328_v22  ;;  %v1573_v27 = vcombine.high %v325_v23, %v329_v53  ;;  %v1150_v15 = vld [vmem:[%s1941_s2] sm:$0xff] }
  0x71   : > { %1073 = vmatpush1.bf16.msra.mxu0 %v1506_v31  ;;  %1114 = vmatpush1.bf16.msra.mxu1 %v1508_v32  ;;  %v321_v31 = vld [vmem:[#allocation2 + $0x338] sm:$0xff]  ;;  %v1570_v32 = vcombine.low %v324_v21, %v328_v22  ;;  %v1151_v22 = vpack.c.bf16 %v1150_v15, %v1150_v15 }
  0x72   : > { %1074 = vmatprep.subr.bf16.mxu0 %v1499_v33  ;;  %1115 = vmatprep.subr.bf16.mxu1 %v1501_v34  ;;  %v1572_v33 = vcombine.low %v325_v23, %v329_v53  ;;  %v1563_v34 = vcombine.high %v316_v28, %v320_v29  ;;  %v1565_v35 = vcombine.high %v317_v30, %v321_v31 }
  0x75   : > { %1075 = vmatpush1.bf16.msra.mxu0 %v1498_v39  ;;  %1116 = vmatpush1.bf16.msra.mxu1 %v1500_v40  ;;  %v313_v39 = vld [vmem:[#allocation2 + $0x2f8] sm:$0xff]  ;;  %v1562_v40 = vcombine.low %v316_v28, %v320_v29 }
  0x76   : > { %1076 = vmatprep.subr.bf16.mxu0 %v1491_v41  ;;  %1117 = vmatprep.subr.bf16.mxu1 %v1493_v61  ;;  %v1564_v41 = vcombine.low %v317_v30, %v321_v31  ;;  %v1555_v61 = vcombine.high %v308_v36, %v312_v37  ;;  %v1557_v42 = vcombine.high %v309_v38, %v313_v39 }
  0x79   : > { %1077 = vmatpush1.bf16.msra.mxu0 %v1490_v46  ;;  %1118 = vmatpush1.bf16.msra.mxu1 %v1492_v47  ;;  %v305_v46 = vld [vmem:[#allocation2 + $0x2b8] sm:$0xff]  ;;  %v1554_v47 = vcombine.low %v308_v36, %v312_v37 }
  0x7a   : > { %1078 = vmatprep.subr.bf16.mxu0 %v1483_v48  ;;  %1119 = vmatprep.subr.bf16.mxu1 %v1485_v49  ;;  %v1556_v48 = vcombine.low %v309_v38, %v313_v39  ;;  %v1547_v49 = vcombine.high %v300_v43, %v304_v44  ;;  %v1549_v50 = vcombine.high %v301_v45, %v305_v46 }
  0x7d   : > { %1079 = vmatpush1.bf16.msra.mxu0 %v1482_v55  ;;  %1120 = vmatpush1.bf16.msra.mxu1 %v1484_v56  ;;  %v297_v55 = vld [vmem:[#allocation2 + $0x278] sm:$0xff]  ;;  %v1546_v56 = vcombine.low %v300_v43, %v304_v44 }
  0x7e   : > { %1080 = vmatprep.subr.bf16.mxu0 %v1475_v57  ;;  %1121 = vmatprep.subr.bf16.mxu1 %v1477_v58  ;;  %v1548_v57 = vcombine.low %v301_v45, %v305_v46  ;;  %v1539_v58 = vcombine.high %v292_v51, %v296_v52  ;;  %v1541_v59 = vcombine.high %v293_v54, %v297_v55 }
  0x81   : > { %1081 = vmatpush1.bf16.msra.mxu0 %v1474_v0  ;;  %1122 = vmatpush1.bf16.msra.mxu1 %v1476_v1  ;;  %v289_v0 = vld [vmem:[#allocation2 + $0x238] sm:$0xff]  ;;  %v1538_v1 = vcombine.low %v292_v51, %v296_v52 }
  0x82   : > { %1082 = vmatprep.subr.bf16.mxu0 %v1467_v2  ;;  %1123 = vmatprep.subr.bf16.mxu1 %v1469_v3  ;;  %v1540_v2 = vcombine.low %v293_v54, %v297_v55  ;;  %v1531_v3 = vcombine.high %v284_v60, %v288_v62  ;;  %v1533_v4 = vcombine.high %v285_v63, %v289_v0 }
  0x83   : > { %v1532_v6 = vcombine.low %v285_v63, %v289_v0 }
  0x85   : > { %1083 = vmatpush1.bf16.msra.mxu0 %v1466_v8  ;;  %1124 = vmatpush1.bf16.msra.mxu1 %v1468_v9  ;;  %v1160_v8 = vld [vmem:[%s1942_s3] sm:$0xff] }
  0x86   : > { %1084 = vmatprep.subr.bf16.mxu0 %v1587_v10  ;;  %1125 = vmatprep.subr.bf16.mxu1 %v1589_v11 }
  0x87   : > { %1163 = vperm.xlu0 %1658, %v1160_v8  }
  0x89   : > { %1085 = vmatpush2.bf16.msra.mxu0 %v1586_v17  ;;  %1126 = vmatpush2.bf16.msra.mxu1 %v1588_v18 }
  0x8a   : > { %1086 = vmatprep.subr.bf16.mxu0 %v1579_v19  ;;  %1127 = vmatprep.subr.bf16.mxu1 %v1581_v20 }
  0x8d   : > { %1087 = vmatpush2.bf16.msra.mxu0 %v1578_v24  ;;  %1128 = vmatpush2.bf16.msra.mxu1 %v1580_v25 }
  0x8e   : > { %1088 = vmatprep.subr.bf16.mxu0 %v1571_v26  ;;  %1129 = vmatprep.subr.bf16.mxu1 %v1573_v27 }
  0x91   : > { %1089 = vmatpush2.bf16.msra.mxu0 %v1570_v32  ;;  %1130 = vmatpush2.bf16.msra.mxu1 %v1572_v33 }
  0x92   : > { %1090 = vmatprep.subr.bf16.mxu0 %v1563_v34  ;;  %1131 = vmatprep.subr.bf16.mxu1 %v1565_v35 }
  0x95   : > { %1091 = vmatpush2.bf16.msra.mxu0 %v1562_v40  ;;  %1132 = vmatpush2.bf16.msra.mxu1 %v1564_v41 }
  0x96   : > { %1092 = vmatprep.subr.bf16.mxu0 %v1555_v61  ;;  %1133 = vmatprep.subr.bf16.mxu1 %v1557_v42 }
  0x99   : > { %1093 = vmatpush2.bf16.msra.mxu0 %v1554_v47  ;;  %1134 = vmatpush2.bf16.msra.mxu1 %v1556_v48 }
  0x9a   : > { %1094 = vmatprep.subr.bf16.mxu0 %v1547_v49  ;;  %1135 = vmatprep.subr.bf16.mxu1 %v1549_v50 }
  0x9d   : > { %1095 = vmatpush2.bf16.msra.mxu0 %v1546_v56  ;;  %1136 = vmatpush2.bf16.msra.mxu1 %v1548_v57 }
  0x9e   : > { %1096 = vmatprep.subr.bf16.mxu0 %v1539_v58  ;;  %1137 = vmatprep.subr.bf16.mxu1 %v1541_v59 }
  0xa1   : > { %1097 = vmatpush2.bf16.msra.mxu0 %v1538_v1  ;;  %1138 = vmatpush2.bf16.msra.mxu1 %v1540_v2 }
  0xa2   : > { %1098 = vmatprep.subr.bf16.mxu0 %v1531_v3  ;;  %1139 = vmatprep.subr.bf16.mxu1 %v1533_v4 }
  0xa5   : > { %1099 = vmatpush2.bf16.msra.mxu0 %v1530_v5  ;;  %1140 = vmatpush2.bf16.msra.mxu1 %v1532_v6 }
  0xa8   : > { %1101 = vmatmul.mubr.bf16.vlgmr.msra.gmra.mxu0 %v1863_v13  ;;  %1142 = vmatmul.mubr.bf16.vlgmr.msra.gmra.mxu1 %v1863_v13 }
  0xa9   : > { %1227 = vmatprep.mubr.bf16.mxu0 %v1755_v7  ;;  %1268 = vmatprep.mubr.bf16.mxu1 %v1755_v7 }
 0x102   : > { %v1164_v38 = vpop.permute.xlu0 %1163 }
 0x128   : > { %v1020_v9 = vpop.f32.mrf.mxu0  ;;  %v1061_v11 = vpop.f32.mrf.mxu1 }
 0x129   : > { %v1152_v10 = vpack.c.bf16 %v1020_v9, %v1020_v9  ;;  %v1154_v12 = vpack.c.bf16 %v1061_v11, %v1061_v11 }
 0x12a   : > { %v1022_v14 = vpop.f32.mrf.mxu0  ;;  %v1063_v17 = vpop.f32.mrf.mxu1 }
 0x12b   : > { %v1172_v13 = vsel %vm1170_vm0, %v1152_v10, 0  ;;  %v1153_v16 = vpack.c.bf16 %v1022_v14, %v1022_v14  ;;  %v1178_v18 = vsel %vm1170_vm0, %v1154_v12, 0  ;;  %v1155_v19 = vpack.c.bf16 %v1063_v17, %v1063_v17 }
 0x12c   : > { %v1024_v20 = vpop.f32.mrf.mxu0  ;;  %v1065_v21 = vpop.f32.mrf.mxu1 }
 0x12d   : > { %1590 = vmatprep.subr.msk.bf16.mxu0 %vm1170_vm0, %v1153_v16  ;;  %1592 = vmatprep.subr.msk.bf16.mxu1 %vm1170_vm0, %v1155_v19 }
 0x12e   : > { %v1025_v23 = vpop.f32.mrf.mxu0  ;;  %1210 = vmatpush1.bf16.msra.mxu0 %v1172_v13  ;;  %v1066_v53 = vpop.f32.mrf.mxu1  ;;  %1251 = vmatpush1.bf16.msra.mxu1 %v1178_v18 }
 0x131   : > { %1591 = vmatmul.mubr.msk.bf16.vlgmr.msra.gmra.mxu0 %vm1166_vm1, %v1151_v22  ;;  %1593 = vmatmul.mubr.msk.bf16.vlgmr.msra.gmra.mxu1 %vm1166_vm1, %v1151_v22 }
 0x132   : > { %1309 = vmatprep.mubr.bf16.mxu0 %v1755_v7  ;;  %1350 = vmatprep.mubr.bf16.mxu1 %v1755_v7 }
 0x168   : > { %v1102_v24 = vpop.f32.mrf.mxu0  ;;  %v1143_v26 = vpop.f32.mrf.mxu1 }
 0x169   : > { %v1156_v25 = vpack.c.bf16 %v1102_v24, %v1102_v24  ;;  %v1158_v27 = vpack.c.bf16 %v1143_v26, %v1143_v26 }
 0x16a   : > { %v1104_v28 = vpop.f32.mrf.mxu0  ;;  %v1145_v30 = vpop.f32.mrf.mxu1 }
 0x16b   : > { %v1157_v29 = vpack.c.bf16 %v1104_v28, %v1104_v28  ;;  %v1159_v31 = vpack.c.bf16 %v1145_v30, %v1145_v30  ;;  %v1184_v33 = vsel %vm1170_vm0, %v1156_v25, 0  ;;  %v1190_v35 = vsel %vm1170_vm0, %v1158_v27, 0 }
 0x16c   : > { %v1106_v32 = vpop.f32.mrf.mxu0  ;;  %v1147_v34 = vpop.f32.mrf.mxu1 }
 0x16d   : > { %1594 = vmatprep.subr.msk.bf16.mxu0 %vm1170_vm0, %v1157_v29  ;;  %1596 = vmatprep.subr.msk.bf16.mxu1 %vm1170_vm0, %v1159_v31 }
 0x16e   : > { %v1107_v36 = vpop.f32.mrf.mxu0  ;;  %1292 = vmatpush1.bf16.msra.mxu0 %v1184_v33  ;;  %v1148_v37 = vpop.f32.mrf.mxu1  ;;  %1333 = vmatpush1.bf16.msra.mxu1 %v1190_v35 }
 0x171   : > { %1595 = vmatmul.mubr.msk.bf16.vlgmr.msra.gmra.mxu0 %vm1166_vm1, %v1151_v22  ;;  %1597 = vmatmul.mubr.msk.bf16.vlgmr.msra.gmra.mxu1 %vm1166_vm1, %v1151_v22 }
 0x1f1   : > { %v1229_v39 = vpop.f32.mrf.mxu0  ;;  %v1270_v40 = vpop.f32.mrf.mxu1 }
 0x1f2   : > { %v1230_v41 = vadd.f32 %v1229_v39, %v1164_v38  ;;  %v1271_v42 = vadd.f32 %v1270_v40, %v1164_v38 }
 0x1f3   : > { %v1231_v61 = vpop.f32.mrf.mxu0  ;;  %v1272_v43 = vpop.f32.mrf.mxu1 }
 0x1f4   : > { %v1232_v44 = vadd.f32 %v1231_v61, %v1164_v38  ;;  %1359 = vst [vmem:[%s205_s29] sm:$0xff] %v1230_v41  ;;  %v1273_v46 = vadd.f32 %v1272_v43, %v1164_v38  ;;  %1361 = vst [vmem:[%s205_s29 + $0x10] sm:$0xff] %v1271_v42 }
 0x1f5   : > { %v1233_v45 = vpop.f32.mrf.mxu0  ;;  %v1274_v47 = vpop.f32.mrf.mxu1 }
 0x1f6   : > { %1360 = vst [vmem:[%s205_s29 + $0x8] sm:$0xff] %v1232_v44  ;;  %1362 = vst [vmem:[%s205_s29 + $0x18] sm:$0xff] %v1273_v46 }
 0x1f7   : > { %v1234_v48 = vpop.f32.mrf.mxu0  ;;  %v1275_v49 = vpop.f32.mrf.mxu1 }
 0x231   : > { %v1311_v50 = vpop.f32.mrf.mxu0  ;;  %v1352_v52 = vpop.f32.mrf.mxu1 }
 0x232   : > { %v1312_v51 = vadd.f32 %v1311_v50, %v1164_v38  ;;  %v1353_v54 = vadd.f32 %v1352_v52, %v1164_v38 }
 0x233   : > { %v1313_v55 = vpop.f32.mrf.mxu0  ;;  %v1354_v57 = vpop.f32.mrf.mxu1 }
 0x234   : > { %1363 = vst [vmem:[%s205_s29 + $0x20] sm:$0xff] %v1312_v51  ;;  %v1314_v56 = vadd.f32 %v1313_v55, %v1164_v38  ;;  %1365 = vst [vmem:[%s205_s29 + $0x30] sm:$0xff] %v1353_v54  ;;  %v1355_v58 = vadd.f32 %v1354_v57, %v1164_v38 }
 0x235   : > { %v1315_v59 = vpop.f32.mrf.mxu0  ;;  %v1356_v60 = vpop.f32.mrf.mxu1 }
 0x236   : > { %1364 = vst [vmem:[%s205_s29 + $0x28] sm:$0xff] %v1314_v56  ;;  %1366 = vst [vmem:[%s205_s29 + $0x38] sm:$0xff] %v1355_v58 }
 0x237   : > { %v1316_v62 = vpop.f32.mrf.mxu0  ;;  %v1357_v63 = vpop.f32.mrf.mxu1 }
 0x238   : > { %1699 = shalt.err (!%p1696_p0)
}
 0x239   : > { %s1700_s13 = scalar_lea.hbm %s1896_s8, 1024  ;;  %s1704_s22 = scalar_lea.hbm %s1943_s4, 2048 }
 0x23a   : > { %p1701_p1 = scmp.ne.s32.totalorder %s1896_s8, %s1700_s13  ;;  %p1705_p4 = scmp.lt.s32.totalorder %s1896_s8, %s1943_s4 }
 0x23b   : > { %p1706_p7 = scmp.lt.s32.totalorder %s1704_s22, %s1700_s13 }
 0x23c   : > { %p1702_p2 = pnand %p1701_p1, %p1820_p5 }
 0x23d   : > { %p1707_p6 = por %p1706_p7, %p1705_p4 }
 0x23e   : > { %p1703_p3 = pneg %p1702_p2 }
 0x240   : > { %p1708_p8 = pnand %p1707_p6, %p1703_p3 }
 0x242   : > { %1711 = shalt.err (!%p1708_p8)
}
 0x243   : > { %1609 = dma.vmem_to_hbm [thread:$0]  (%p1820_p5), %s1898_s5, 1024, %s1896_s8, %s1368_s19  }
 0x244 PF: > { %p1621_p9 = scmp.ge.s32.totalorder %s1750_s18, 2  ;;  %s1394_s28 = sand.u32 1, %s1738_s15  }
 0x245   : > { %p1947_p10 = scmp.ne.s32.totalorder %s1945_s26, 0  ;;  %s1395_s29 = scalar_lea.sflag [#allocation4], %s1394_s28 }
 0x247   : > { %p1616_p11 = pnand %p1621_p9, %p1947_p10 }
 0x249   : > { %p1617_p12 = pneg %p1616_p11 }
 0x24b   : > { %1733 = dma.done.wait (%p1617_p12), %s1395_s29, 1024  }
 0x24c   : > { %1735 = vsyncadd (%p1617_p12), %s1395_s29, 4294966272  ;;  %p15_p13 = scmp.ge.s32.totalorder %s1807_s21, 4   ;;  %s1948_s15 = smov %s1742_s16 }
 0x24d   : > { %s1949_s16 = smov %s1746_s17  ;;  %s1950_s17 = smov %s1818_s24 }
 0x24e   : > { %s1951_s18 = smov %s1807_s21  ;;  %17 = sbr.rel (!%p15_p13) target bundleno = 4 (0x4), region = 76 }
 0x253   :  { %1400 = vsyncpa [#allocation3], 1 }
 0x254   :  { %1402 = vsyncpa [#allocation3 + $0x1], 1 }
 0x255   :  { %1403 = vsyncpa [#allocation4], 1 }
 0x256   :  { %1405 = vsyncpa [#allocation4 + $0x1], 1 }

</bundles_post_ra>
